<compile_context>
chip_gen: v7x
topology: tpu7x:2x2x1
jax: 0.10.0
libtpu: 0.0.40
codegen_flags: <defaults>
</compile_context>

<pallas_src>
import functools
import math

import jax
import jax.numpy as jnp
from jax import lax
from jax.experimental import pallas as pl
from jax.experimental.pallas import tpu as pltpu


_F32_TEMPS = 3          # tile-sized f32 temporaries inside the kernels (x, xc, result)
_LANE = 128
_SUBLANE = 8


# ------------------------------ chip-keyed config -----------------------------


@functools.lru_cache(maxsize=1)
def _tpu_config():
    """Generation-keyed tiling parameters (conservative defaults if unrecognized)."""
    kind = ""
    try:
        kind = (jax.devices()[0].device_kind or "").lower()
    except Exception:
        pass
    is_v5e = ("v5 lite" in kind) or ("v5e" in kind) or ("v5lite" in kind)
    is_v6 = "v6" in kind
    is_v7 = ("v7" in kind) or ("tpu7" in kind)
    if is_v5e or is_v6:
        vmem_limit = 64 * 1024 * 1024      # 128 MiB physical VMEM on v5e/v6e
    else:
        vmem_limit = 32 * 1024 * 1024      # v7x: 64 MiB per TC; safe default elsewhere
    return {
        # v5e's MXU makes wide packed averaging matmuls compute-bound even at HIGH,
        # so only pack up to one vreg width there; 384 stays memory-bound on v6e/v7x.
        "max_packed_width": 128 if is_v5e else 384,
        "two_tc": is_v7,                   # v7x: 2 TensorCores share the chip's HBM BW
        "vmem_limit": vmem_limit,
        "usable": int(0.7 * vmem_limit),   # headroom for Mosaic internals
    }


# ------------------------------ kernels ---------------------------------------


def _ln_rows_kernel(x_ref, wb_ref, o_ref, *, eps):
    """LayerNorm over the last axis of a (TR, C) tile. wb_ref = [weight; bias]."""
    x = x_ref[...].astype(jnp.float32)
    w = wb_ref[0:1, :].astype(jnp.float32)
    b = wb_ref[1:2, :].astype(jnp.float32)
    mean = jnp.mean(x, axis=-1, keepdims=True)
    xc = x - mean
    var = jnp.mean(xc * xc, axis=-1, keepdims=True)   # biased variance (matches torch)
    inv = lax.rsqrt(var + eps)
    o_ref[...] = (xc * inv * w + b).astype(o_ref.dtype)


def _ln_rows_packed_kernel(x_ref, wb_ref, m_ref, o_ref, *, eps, c):
    """Lane-packed LayerNorm: each (TR, g*C) row holds g logical rows of C channels.

    m_ref is a (g*C, g*C) block-diagonal 0/1 segment matrix, so `x @ m` gives each
    lane the *sum* of its own logical row, already broadcast across that row's C lanes
    (segmented reduction on the MXU; rows never mix).  0/1 entries are exact in bf16,
    so Precision.HIGH (3 MXU passes) already yields ~f32-accurate sums; the 1/C scale
    is applied on the VPU afterwards.
    """
    x = x_ref[...].astype(jnp.float32)
    w = wb_ref[0:1, :].astype(jnp.float32)   # weight tiled g times
    b = wb_ref[1:2, :].astype(jnp.float32)   # bias tiled g times
    m = m_ref[...]
    inv_c = jnp.float32(1.0 / c)
    mean = jnp.dot(x, m, precision=lax.Precision.HIGH,
                   preferred_element_type=jnp.float32) * inv_c
    xc = x - mean
    var = jnp.dot(xc * xc, m, precision=lax.Precision.HIGH,
                  preferred_element_type=jnp.float32) * inv_c
    inv = lax.rsqrt(var + eps)
    o_ref[...] = (xc * inv * w + b).astype(o_ref.dtype)


def _ln_cf_kernel(x_ref, wb_ref, o_ref, *, eps):
    """LayerNorm over the channel (sublane) axis of a (NB, C, T) tile (channels_first)."""
    x = x_ref[...].astype(jnp.float32)
    w = wb_ref[:, 0:1].astype(jnp.float32)[None, :, :]
    b = wb_ref[:, 1:2].astype(jnp.float32)[None, :, :]
    mean = jnp.mean(x, axis=1, keepdims=True)
    xc = x - mean
    var = jnp.mean(xc * xc, axis=1, keepdims=True)
    inv = lax.rsqrt(var + eps)
    o_ref[...] = (xc * inv * w + b).astype(o_ref.dtype)


# ------------------------------ tiling helpers ---------------------------------


def _round_down(v, m):
    return max(m, (v // m) * m)


def _pick_row_tile(rows, cp, itemsize, cfg, packed, override=None):
    """Row tile for a (rows, cp) block: 2 in + 2 out pipelined buffers (at the I/O
    dtype) plus the f32 in-kernel temporaries (and the segment matrix, if packed) must
    fit the scoped VMEM budget.  On 2-TensorCore chips leave >= 2 grid steps."""
    if override is not None:
        return rows if override >= rows else override      # override: multiple of 8
    budget = cfg["usable"]
    if packed:
        budget -= 3 * cp * cp * 4           # segment matrix: 2 pipelined bufs + 1 temp
    per_row = cp * (4 * itemsize + _F32_TEMPS * 4)
    budget = max(budget, _SUBLANE * per_row)
    tile = min(_round_down(budget // per_row, _SUBLANE), 8192)
    if cfg["two_tc"]:
        half = ((rows + 1) // 2 + _SUBLANE - 1) // _SUBLANE * _SUBLANE
        tile = min(tile, half)
    return rows if tile >= rows else tile


def _pick_cf_tiles(b_, c, hw, itemsize, cfg, block_hw=None):
    """Pick (nb images per block, spatial tile t) for the channels_first path."""
    per_elem = 4 * itemsize + _F32_TEMPS * 4
    budget = cfg["usable"]
    if block_hw is not None:
        t = hw if block_hw >= hw else block_hw              # override: multiple of 128
    else:
        max_t = budget // (c * per_elem)
        t = hw if hw <= max_t else _round_down(max_t, _LANE)
    nb = min(b_, max(1, budget // (c * t * per_elem)))
    if cfg["two_tc"]:
        steps = (-(-b_ // nb)) * (-(-hw // t))
        if steps < 2:
            if b_ >= 2:
                nb = (b_ + 1) // 2
            elif hw > _LANE and block_hw is None:
                t = ((hw + 1) // 2 + _LANE - 1) // _LANE * _LANE
    return nb, t


# ------------------------------ wrappers ---------------------------------------


def _layernorm_rows(x2d, weight, bias, eps, block_rows=None):
    """LayerNorm over the last axis of a (rows, C) array."""
    rows, c = x2d.shape
    cfg = _tpu_config()

    # Lane-packing factor: smallest g with (g*C) % 128 == 0, if the packed width stays
    # under the chip's cap and g divides the row count.  g == 1 -> plain per-row path.
    g = 1
    if c % _LANE != 0:
        cand = _LANE // math.gcd(c, _LANE)
        if cand * c <= cfg["max_packed_width"] and rows % cand == 0:
            g = cand
        # TODO(synk): when rows % cand != 0, pack the divisible prefix and run the
        # <= g-1 remainder rows through the plain kernel rather than falling back for
        # the whole tensor (needs a copy-free way to stitch the two outputs).
    cp = g * c
    rp = rows // g
    xp = x2d.reshape(rp, cp)                                # free reshape (adjacent dims)

    wb = jnp.stack([jnp.tile(weight, g), jnp.tile(bias, g)], axis=0)   # (2, g*C)

    tile = _pick_row_tile(rp, cp, x2d.dtype.itemsize, cfg, g > 1, block_rows)
    grid = (pl.cdiv(rp, tile),)

    x_spec = pl.BlockSpec((tile, cp), lambda i: (i, 0))
    wb_spec = pl.BlockSpec((2, cp), lambda i: (0, 0))
    out_spec = pl.BlockSpec((tile, cp), lambda i: (i, 0))
    params = pltpu.CompilerParams(dimension_semantics=("parallel",),
                                  vmem_limit_bytes=cfg["vmem_limit"])
    out_shape = jax.ShapeDtypeStruct((rp, cp), x2d.dtype)

    if g > 1:
        # 0/1 block-diagonal segment matrix (no 1/C folded in -> exact values).
        group = jnp.arange(cp, dtype=jnp.int32) // c
        m = (group[:, None] == group[None, :]).astype(jnp.float32)     # (cp, cp)
        out = pl.pallas_call(
            functools.partial(_ln_rows_packed_kernel, eps=eps, c=c),
            out_shape=out_shape,
            grid_spec=pltpu.PrefetchScalarGridSpec(
                num_scalar_prefetch=0,
                grid=grid,
                in_specs=[x_spec, wb_spec, pl.BlockSpec((cp, cp), lambda i: (0, 0))],
                out_specs=out_spec,
            ),
            compiler_params=params,
        )(xp, wb, m)
    else:
        out = pl.pallas_call(
            functools.partial(_ln_rows_kernel, eps=eps),
            out_shape=out_shape,
            grid_spec=pltpu.PrefetchScalarGridSpec(
                num_scalar_prefetch=0,
                grid=grid,
                in_specs=[x_spec, wb_spec],
                out_specs=out_spec,
            ),
            compiler_params=params,
        )(xp, wb)

    return out.reshape(rows, c)


def _layernorm_channels_first(x, weight, bias, eps, block_hw=None):
    """LayerNorm over the channel axis of (B, C, H, W), no transposes."""
    b_, c, h, w = x.shape
    hw = h * w
    cfg = _tpu_config()
    x3 = x.reshape(b_, c, hw)                               # free reshape
    wb = jnp.stack([weight, bias], axis=1)                  # (C, 2)

    nb, t = _pick_cf_tiles(b_, c, hw, x.dtype.itemsize, cfg, block_hw)
    grid = (pl.cdiv(b_, nb), pl.cdiv(hw, t))

    out = pl.pallas_call(
        functools.partial(_ln_cf_kernel, eps=eps),
        out_shape=jax.ShapeDtypeStruct((b_, c, hw), x.dtype),
        grid_spec=pltpu.PrefetchScalarGridSpec(
            num_scalar_prefetch=0,
            grid=grid,
            in_specs=[
                pl.BlockSpec((nb, c, t), lambda bi, ti: (bi, 0, ti)),
                pl.BlockSpec((c, 2), lambda bi, ti: (0, 0)),
            ],
            out_specs=pl.BlockSpec((nb, c, t), lambda bi, ti: (bi, 0, ti)),
        ),
        compiler_params=pltpu.CompilerParams(
            dimension_semantics=("parallel", "parallel"),
            vmem_limit_bytes=cfg["vmem_limit"],
        ),
    )(x3, wb)
    return out.reshape(b_, c, h, w)


def layer_norm(x, weight, bias, eps=1e-6, data_format="channels_last",
               *, block_rows=None, block_hw=None):
    """Forward pass of ConvNeXt LayerNorm (matches the PyTorch module).

    block_rows / block_hw are optional tile-size overrides (tuning / testing only;
    block_rows must be a multiple of 8, block_hw a multiple of 128).
    """
    if data_format not in ("channels_last", "channels_first"):
        raise NotImplementedError
    if data_format == "channels_last":
        c = x.shape[-1]
        lead = x.shape[:-1]
        y = _layernorm_rows(x.reshape(-1, c), weight, bias, eps, block_rows)
        return y.reshape(*lead, c)
    return _layernorm_channels_first(x, weight, bias, eps, block_hw)


# ------------------------------ reference & test --------------------------------


def _reference(x, weight, bias, eps, data_format):
    x = x.astype(jnp.float32)
    if data_format == "channels_last":
        mean = jnp.mean(x, axis=-1, keepdims=True)
        var = jnp.mean((x - mean) ** 2, axis=-1, keepdims=True)
        return (x - mean) / jnp.sqrt(var + eps) * weight + bias
    mean = jnp.mean(x, axis=1, keepdims=True)
    var = jnp.mean((x - mean) ** 2, axis=1, keepdims=True)
    xhat = (x - mean) / jnp.sqrt(var + eps)
    return weight[None, :, None, None] * xhat + bias[None, :, None, None]


if __name__ == "__main__":
    key = jax.random.PRNGKey(0)
    k1, k2, k3, k4, k5, k6 = jax.random.split(key, 6)

    eps = 1e-6
    C = 32
    weight = jnp.ones((C,), jnp.float32) + 0.1 * jax.random.normal(k3, (C,), jnp.float32)
    bias = jnp.zeros((C,), jnp.float32) + 0.1 * jax.random.normal(k4, (C,), jnp.float32)

    ok = True

    # channels_first (B, C, H, W): native path, no transposes, nb images per block.
    x_cf = jax.random.normal(k1, (2, C, 8, 8), jnp.float32)
    y_cf = jax.block_until_ready(layer_norm(x_cf, weight, bias, eps, "channels_first"))
    ok &= bool(jnp.allclose(y_cf, _reference(x_cf, weight, bias, eps, "channels_first"),
                            atol=1e-5, rtol=1e-5))

    # channels_last (B, H, W, C): lane-packed path (g=4 -> 128 lanes).
    x_cl = jax.random.normal(k2, (2, 8, 8, C), jnp.float32)
    ref_cl = _reference(x_cl, weight, bias, eps, "channels_last")
    y_cl = jax.block_until_ready(layer_norm(x_cl, weight, bias, eps, "channels_last"))
    ok &= bool(jnp.allclose(y_cl, ref_cl, atol=1e-5, rtol=1e-5))

    # ConvNeXt-like C=96 channels_last (packed to 384 lanes on v6e/v7x, unpacked on v5e).
    C2 = 96
    w2 = jnp.ones((C2,), jnp.float32) + 0.1 * jax.random.normal(k5, (C2,), jnp.float32)
    b2 = jnp.zeros((C2,), jnp.float32) + 0.1 * jax.random.normal(k6, (C2,), jnp.float32)
    x_cl2 = jax.random.normal(k1, (2, 4, 4, C2), jnp.float32)
    y_cl2 = jax.block_until_ready(layer_norm(x_cl2, w2, b2, eps, "channels_last"))
    ok &= bool(jnp.allclose(y_cl2, _reference(x_cl2, w2, b2, eps, "channels_last"),
                            atol=1e-5, rtol=1e-5))

    # Forced small tiles: exercise multi-step grids with masked partial tail blocks
    # (no jnp.pad anywhere in the wrappers).
    y_cl_t = jax.block_until_ready(
        layer_norm(x_cl, weight, bias, eps, "channels_last", block_rows=24))
    ok &= bool(jnp.allclose(y_cl_t, ref_cl, atol=1e-5, rtol=1e-5))

    x_cf2 = jax.random.normal(k2, (2, C, 16, 20), jnp.float32)   # HW=320 -> 3 tiles of 128
    y_cf2 = jax.block_until_ready(
        layer_norm(x_cf2, weight, bias, eps, "channels_first", block_hw=128))
    ok &= bool(jnp.allclose(y_cf2, _reference(x_cf2, weight, bias, eps, "channels_first"),
                            atol=1e-5, rtol=1e-5))

    # bf16 activations: dtype-aware tile sizing; output stays bf16.
    x_bf = x_cl.astype(jnp.bfloat16)
    y_bf = jax.block_until_ready(layer_norm(x_bf, weight, bias, eps, "channels_last"))
    ok &= bool(jnp.allclose(y_bf.astype(jnp.float32), ref_cl, atol=5e-2, rtol=5e-2))

    assert ok
    print("KERNEL_OK")
</pallas_src>

<mosaic_0001>
module attributes {stable_mosaic.version = 11 : i64} {
  func.func @_ln_cf_kernel(%arg0: i32, %arg1: i32, %arg2: memref<2x32x64xf32, #tpu.memory_space<vmem>>, %arg3: memref<32x2xf32, #tpu.memory_space<vmem>>, %arg4: memref<2x32x64xf32, #tpu.memory_space<vmem>>) attributes {dimension_semantics = [#tpu.dimension_semantics<parallel>, #tpu.dimension_semantics<parallel>], iteration_bounds = array<i64: 1, 1>, scalar_prefetch = 0 : i64, scratch_operands = 0 : i64, tpu.core_type = #tpu.core_type<tc>, window_params = [{transform_indices = @transform_0, window_bounds = array<i64: 2, 32, 64>}, {pipeline_mode = #tpu.pipeline_mode<synchronous>, transform_indices = @transform_1, window_bounds = array<i64: 32, 2>}, {transform_indices = @transform_2, window_bounds = array<i64: 2, 32, 64>}]} {
    %c0 = arith.constant 0 : index
    %c0_0 = arith.constant 0 : index
    %c0_1 = arith.constant 0 : index
    %0 = vector.load %arg2[%c0, %c0_0, %c0_1] : memref<2x32x64xf32, #tpu.memory_space<vmem>>, vector<2x32x64xf32>
    %c0_2 = arith.constant 0 : index
    %c0_3 = arith.constant 0 : index
    %1 = vector.load %arg3[%c0_2, %c0_3] : memref<32x2xf32, #tpu.memory_space<vmem>>, vector<32x1xf32>
    %2 = vector.shape_cast %1 : vector<32x1xf32> to vector<1x32x1xf32>
    %c0_4 = arith.constant 0 : index
    %c1 = arith.constant 1 : index
    %3 = vector.load %arg3[%c0_4, %c1] : memref<32x2xf32, #tpu.memory_space<vmem>>, vector<32x1xf32>
    %4 = vector.shape_cast %3 : vector<32x1xf32> to vector<1x32x1xf32>
    %cst = arith.constant dense<0.000000e+00> : vector<2x64xf32>
    %5 = vector.multi_reduction <add>, %0, %cst [1] : vector<2x32x64xf32> to vector<2x64xf32>
    %6 = vector.shape_cast %5 : vector<2x64xf32> to vector<2x1x64xf32>
    %cst_5 = arith.constant 3.200000e+01 : f32
    %7 = vector.broadcast %cst_5 : f32 to vector<2x1x64xf32>
    %8 = arith.divf %6, %7 : vector<2x1x64xf32>
    %9 = vector.broadcast %8 : vector<2x1x64xf32> to vector<2x32x64xf32>
    %10 = arith.subf %0, %9 : vector<2x32x64xf32>
    %11 = arith.mulf %10, %10 : vector<2x32x64xf32>
    %cst_6 = arith.constant dense<0.000000e+00> : vector<2x64xf32>
    %12 = vector.multi_reduction <add>, %11, %cst_6 [1] : vector<2x32x64xf32> to vector<2x64xf32>
    %13 = vector.shape_cast %12 : vector<2x64xf32> to vector<2x1x64xf32>
    %cst_7 = arith.constant 3.200000e+01 : f32
    %14 = vector.broadcast %cst_7 : f32 to vector<2x1x64xf32>
    %15 = arith.divf %13, %14 : vector<2x1x64xf32>
    %cst_8 = arith.constant 9.99999997E-7 : f32
    %16 = vector.broadcast %cst_8 : f32 to vector<2x1x64xf32>
    %17 = arith.addf %15, %16 : vector<2x1x64xf32>
    %18 = math.rsqrt %17 : vector<2x1x64xf32>
    %19 = vector.broadcast %18 : vector<2x1x64xf32> to vector<2x32x64xf32>
    %20 = arith.mulf %10, %19 : vector<2x32x64xf32>
    %21 = vector.broadcast %2 : vector<1x32x1xf32> to vector<2x32x64xf32>
    %22 = arith.mulf %20, %21 : vector<2x32x64xf32>
    %23 = vector.broadcast %4 : vector<1x32x1xf32> to vector<2x32x64xf32>
    %24 = arith.addf %22, %23 : vector<2x32x64xf32>
    %c0_9 = arith.constant 0 : index
    %c0_10 = arith.constant 0 : index
    %c0_11 = arith.constant 0 : index
    %25 = vector.load %arg4[%c0_9, %c0_10, %c0_11] : memref<2x32x64xf32, #tpu.memory_space<vmem>>, vector<2x32x64xf32>
    tpu.vector_store %arg4[%c0_9, %c0_10, %c0_11], %24 {strides = array<i32>} : memref<2x32x64xf32, #tpu.memory_space<vmem>>, vector<2x32x64xf32>,
    return
  }
  func.func @transform_0(%arg0: i32, %arg1: i32) -> (i32, i32, i32) {
    %c0_i32 = arith.constant 0 : i32
    %c0_i32_0 = arith.constant 0 : i32
    return %arg0, %c0_i32, %arg1 : i32, i32, i32
  }
  func.func @transform_1(%arg0: i32, %arg1: i32) -> (i32, i32) {
    %c0_i32 = arith.constant 0 : i32
    %c0_i32_0 = arith.constant 0 : i32
    %c0_i32_1 = arith.constant 0 : i32
    return %c0_i32, %c0_i32_0 : i32, i32
  }
  func.func @transform_2(%arg0: i32, %arg1: i32) -> (i32, i32, i32) {
    %c0_i32 = arith.constant 0 : i32
    %c0_i32_0 = arith.constant 0 : i32
    return %arg0, %c0_i32, %arg1 : i32, i32, i32
  }
}

</mosaic_0001>

<bundles_post_ra>
// kernel: tpu_custom_call.1
= control target key start
LH: loop header
LB: loop body
LE: loop exit
PB: predicated region body
PF: predicated region fallthrough
CT: control target
= control target key end

     0   :  { %7 = vsyncpa [#allocation3], 0  ;;  %s350_s0 = inlined_call_operand.hbm [shape: f32[2,32,64], index: 0, kind: input, shape index: {}]   ;;  %s351_s1 = inlined_call_operand.vmem [shape: f32[32,2], index: 1, kind: input, shape index: {}]   ;;  %s352_s2 = inlined_call_operand.hbm [shape: f32[2,32,64], index: 2, kind: output, shape index: {}]  }
   0x1   :  { %8 = vsyncpa [#allocation4], 0  ;;  %s263_s9 = smov [#allocation2]   ;;  %s215_s13 = scalar_lea.hbm %s350_s0, 1024 }
   0x2   :  { %s14_s10 = sshll.u32 %s263_s9, 4  ;;  %p216_p0 = scmp.ne.s32.totalorder %s350_s0, %s215_s13  ;;  %s15_s10 = int_to_ptr.vmem [resolvable:$true] %s14_s10 }
   0x3   :  { %p219_p1 = scmp.lt.u32.totalorder %s215_s13, %s350_s0 }
   0x5   :  { %p221_p2 = pnand %p219_p1, %p216_p0 }
   0x7   :  { %224 = shalt.err (!%p221_p2)
}
   0x8   :  { %s225_s18 = scalar_lea.vmem %s15_s10, 1024  ;;  %p230_p4 = scmp.lt.s32.totalorder %s15_s10, %s15_s10 }
   0x9   :  { %p226_p3 = scmp.ne.s32.totalorder %s15_s10, %s225_s18  ;;  %p231_p5 = scmp.lt.s32.totalorder %s225_s18, %s225_s18 }
   0xb   :  { %p232_p6 = por %p231_p5, %p230_p4 }
   0xd   :  { %p233_p7 = pnand %p232_p6, %p226_p3 }
   0xf   :  { %236 = shalt.err (!%p233_p7)
}
  0x10   :  { %s264_s19 = smov 128   ;;  %s265_s20 = smov 8  }
  0x11   :  { %20 = dma.hbm_to_vmem [thread:$0]  %s350_s0, 1024, %s15_s10, [#allocation3], %s264_s19, %s264_s19, %s265_s20  }
  0x12   :  { %259 = dma.done.wait [#allocation3], 1024  }
  0x13   :  { %260 = vsyncadd [#allocation3], 4294966272  ;;  %v266_v0 = vmov 0   ;;  %v36_v1 = vld [vmem:[%s351_s1 + $0x10] sm:$0xff]  ;;  %v34_v2 = vld [vmem:[%s351_s1] sm:$0xff]  ;;  %v267_v5 = vmov 1  }
  0x14   :  { %208 = vset.pattern.permute.xlu1 %v266_v0  ;;  %207 = vset.pattern.permute.xlu0 %v266_v0  ;;  %v37_v3 = vld [vmem:[%s351_s1 + $0x18] sm:$0xff]  ;;  %v35_v4 = vld [vmem:[%s351_s1 + $0x8] sm:$0xff]  ;;  %vm38_vm0 = vcmask 523264   ;;  %v26_v6 = vld [vmem:[#allocation2] sm:$0xff]  ;;  %s268_s1 = smov [#allocation5]  }
  0x15   :  { %136 = vperm.xlu1 %208, %v36_v1   ;;  %126 = vperm.xlu0 %207, %v34_v2   ;;  %v27_v7 = vld [vmem:[#allocation2 + $0x8] sm:$0xff]  ;;  %v30_v8 = vld [vmem:[#allocation2 + $0x20] sm:$0xff]  ;;  %v39_v10 = vsel %vm38_vm0, %v26_v6, 0.0  ;;  %v28_v12 = vld [vmem:[#allocation2 + $0x10] sm:$0xff]  ;;  %s189_s30 = sshll.u32 %s268_s1, 4  ;;  %s190_s30 = int_to_ptr.vmem [resolvable:$true] %s189_s30 }
  0x16   :  { %v31_v9 = vld [vmem:[#allocation2 + $0x28] sm:$0xff]  ;;  %v40_v11 = vsel %vm38_vm0, %v27_v7, 0.0  ;;  %v52_v13 = vsel %vm38_vm0, %v30_v8, 0.0  ;;  %v32_v15 = vld [vmem:[#allocation2 + $0x30] sm:$0xff]  ;;  %v42_v17 = vsel %vm38_vm0, %v28_v12, 0.0  ;;  %v29_v19 = vld [vmem:[#allocation2 + $0x18] sm:$0xff]  ;;  %p242_p9 = scmp.lt.s32.totalorder %s190_s30, %s190_s30 }
  0x17   :  { %v53_v14 = vsel %vm38_vm0, %v31_v9, 0.0  ;;  %v41_v16 = vadd.f32 %v40_v11, %v39_v10  ;;  %v55_v20 = vsel %vm38_vm0, %v32_v15, 0.0  ;;  %v33_v21 = vld [vmem:[#allocation2 + $0x38] sm:$0xff]  ;;  %v44_v23 = vsel %vm38_vm0, %v29_v19, 0.0  ;;  %s237_s3 = scalar_lea.vmem %s190_s30, 1024 }
  0x18   :  { %v54_v18 = vadd.f32 %v53_v14, %v52_v13  ;;  %v57_v25 = vsel %vm38_vm0, %v33_v21, 0.0  ;;  %p238_p8 = scmp.ne.s32.totalorder %s190_s30, %s237_s3  ;;  %p243_p10 = scmp.lt.s32.totalorder %s237_s3, %s237_s3 }
  0x19   :  { %141 = vperm.xlu1 %208, %v37_v3   ;;  %131 = vperm.xlu0 %207, %v35_v4   ;;  %v43_v22 = vadd.f32 %v42_v17, %v41_v16 }
  0x1a   :  { %v56_v24 = vadd.f32 %v55_v20, %v54_v18  ;;  %p244_p11 = por %p243_p10, %p242_p9 }
  0x1b   :  { %v45_v26 = vadd.f32 %v44_v23, %v43_v22 }
  0x1c   :  { %v58_v27 = vadd.f32 %v57_v25, %v56_v24  ;;  %p245_p12 = pnand %p244_p11, %p238_p8 }
  0x1d   :  { %210 = vset.pattern.permute.xlu1 %v267_v5  ;;  %209 = vset.pattern.permute.xlu0 %v267_v5  ;;  %v46_v28 = vrot.slane %v45_v26, 4 }
  0x1e   :  { %157 = vperm.xlu1 %210, %v35_v4   ;;  %153 = vperm.xlu0 %209, %v34_v2   ;;  %v59_v29 = vrot.slane %v58_v27, 4 }
  0x1f   :  { %v47_v30 = vadd.f32 %v46_v28, %v45_v26 }
  0x20   :  { %v60_v31 = vadd.f32 %v59_v29, %v58_v27 }
  0x21   :  { %v48_v32 = vrot.slane %v47_v30, 2 }
  0x22   :  { %161 = vperm.xlu1 %210, %v36_v1   ;;  %165 = vperm.xlu0 %209, %v37_v3   ;;  %v61_v33 = vrot.slane %v60_v31, 2 }
  0x23   :  { %v49_v34 = vadd.f32 %v48_v32, %v47_v30 }
  0x24   :  { %v62_v35 = vadd.f32 %v61_v33, %v60_v31 }
  0x25   :  { %v50_v36 = vrot.slane %v49_v34, 1 }
  0x26   :  { %v63_v37 = vrot.slane %v62_v35, 1 }
  0x27   :  { %v51_v38 = vadd.f32 %v50_v36, %v49_v34 }
  0x28   :  { %v64_v39 = vadd.f32 %v63_v37, %v62_v35 }
  0x29   :  { %v66_v40 = vmul.f32 0.03125, %v51_v38 }
  0x2a   :  { %v67_v41 = vmul.f32 0.03125, %v64_v39 }
  0x2b   :  { %v68_v42 = vsub.f32 %v26_v6, %v66_v40  ;;  %v69_v43 = vsub.f32 %v27_v7, %v66_v40  ;;  %v70_v46 = vsub.f32 %v28_v12, %v66_v40  ;;  %v71_v52 = vsub.f32 %v29_v19, %v66_v40 }
  0x2c   :  { %v72_v44 = vsub.f32 %v30_v8, %v67_v41  ;;  %v73_v45 = vsub.f32 %v31_v9, %v67_v41  ;;  %v74_v49 = vsub.f32 %v32_v15, %v67_v41  ;;  %v75_v56 = vsub.f32 %v33_v21, %v67_v41 }
  0x2d   :  { %v76_v47 = vmul.f32 %v68_v42, %v68_v42  ;;  %v77_v48 = vmul.f32 %v69_v43, %v69_v43  ;;  %v78_v53 = vmul.f32 %v70_v46, %v70_v46  ;;  %v79_v61 = vmul.f32 %v71_v52, %v71_v52 }
  0x2e   :  { %v80_v50 = vmul.f32 %v72_v44, %v72_v44  ;;  %v81_v51 = vmul.f32 %v73_v45, %v73_v45  ;;  %v82_v57 = vmul.f32 %v74_v49, %v74_v49  ;;  %v83_v0 = vmul.f32 %v75_v56, %v75_v56 }
  0x2f   :  { %v84_v54 = vsel %vm38_vm0, %v76_v47, 0.0  ;;  %v85_v55 = vsel %vm38_vm0, %v77_v48, 0.0  ;;  %v87_v62 = vsel %vm38_vm0, %v78_v53, 0.0  ;;  %v89_v3 = vsel %vm38_vm0, %v79_v61, 0.0 }
  0x30   :  { %v97_v58 = vsel %vm38_vm0, %v80_v50, 0.0  ;;  %v98_v59 = vsel %vm38_vm0, %v81_v51, 0.0  ;;  %v86_v60 = vadd.f32 %v85_v55, %v84_v54  ;;  %v100_v1 = vsel %vm38_vm0, %v82_v57, 0.0 }
  0x31   :  { %v99_v63 = vadd.f32 %v98_v59, %v97_v58  ;;  %v102_v5 = vsel %vm38_vm0, %v83_v0, 0.0 }
  0x32   :  { %v88_v2 = vadd.f32 %v87_v62, %v86_v60 }
  0x33   :  { %v101_v4 = vadd.f32 %v100_v1, %v99_v63 }
  0x34   :  { %v90_v6 = vadd.f32 %v89_v3, %v88_v2 }
  0x35   :  { %v103_v7 = vadd.f32 %v102_v5, %v101_v4 }
  0x36   :  { %v91_v8 = vrot.slane %v90_v6, 4 }
  0x37   :  { %v104_v9 = vrot.slane %v103_v7, 4 }
  0x38   :  { %v92_v10 = vadd.f32 %v91_v8, %v90_v6 }
  0x39   :  { %v105_v11 = vadd.f32 %v104_v9, %v103_v7 }
  0x3a   :  { %v93_v12 = vrot.slane %v92_v10, 2 }
  0x3b   :  { %v106_v13 = vrot.slane %v105_v11, 2 }
  0x3c   :  { %v94_v14 = vadd.f32 %v93_v12, %v92_v10 }
  0x3d   :  { %v107_v15 = vadd.f32 %v106_v13, %v105_v11 }
  0x3e   :  { %v95_v16 = vrot.slane %v94_v14, 1 }
  0x3f   :  { %v108_v17 = vrot.slane %v107_v15, 1 }
  0x40   :  { %v96_v18 = vadd.f32 %v95_v16, %v94_v14 }
  0x41   :  { %v109_v19 = vadd.f32 %v108_v17, %v107_v15 }
  0x42   :  { %v110_v20 = vmul.f32 0.03125, %v96_v18 }
  0x43   :  { %v111_v21 = vmul.f32 0.03125, %v109_v19 }
  0x44   :  { %v112_v22 = vadd.f32 1e-06, %v110_v20 }
  0x45   :  { %v113_v23 = vadd.f32 1e-06, %v111_v21 }
  0x46   :  { %211 = vrsqrt.f32 %v112_v22 }
  0x47   :  { %213 = vrsqrt.f32 %v113_v23 }
  0x50   :  { %v212_v24 = vpop.eup %211 }
  0x51   :  { %v214_v27 = vpop.eup %213  ;;  %v116_v28 = vmul.f32 %v212_v24, %v68_v42  ;;  %v117_v32 = vmul.f32 %v212_v24, %v69_v43  ;;  %v118_v34 = vmul.f32 %v212_v24, %v70_v46  ;;  %v119_v36 = vmul.f32 %v212_v24, %v71_v52 }
  0x52   :  { %v120_v29 = vmul.f32 %v214_v27, %v72_v44  ;;  %v121_v33 = vmul.f32 %v214_v27, %v73_v45  ;;  %v122_v35 = vmul.f32 %v214_v27, %v74_v49  ;;  %v123_v37 = vmul.f32 %v214_v27, %v75_v56 }
  0x94   :  { %v137_v25 = vpop.permute.xlu1 %136  ;;  %v127_v26 = vpop.permute.xlu0 %126 }
  0x95   :  { %v144_v38 = vmul.f32 %v127_v26, %v116_v28  ;;  %v148_v39 = vmul.f32 %v127_v26, %v120_v29  ;;  %v146_v42 = vmul.f32 %v137_v25, %v118_v34  ;;  %v150_v44 = vmul.f32 %v137_v25, %v122_v35 }
  0x98   :  { %v142_v30 = vpop.permute.xlu1 %141  ;;  %v132_v31 = vpop.permute.xlu0 %131 }
  0x99   :  { %v145_v40 = vmul.f32 %v132_v31, %v117_v32  ;;  %v149_v41 = vmul.f32 %v132_v31, %v121_v33  ;;  %v147_v43 = vmul.f32 %v142_v30, %v119_v36  ;;  %v151_v45 = vmul.f32 %v142_v30, %v123_v37 }
  0x9d   :  { %v158_v47 = vpop.permute.xlu1 %157  ;;  %v154_v48 = vpop.permute.xlu0 %153 }
  0x9e   :  { %v169_v50 = vadd.f32 %v158_v47, %v145_v40  ;;  %v173_v51 = vadd.f32 %v158_v47, %v149_v41  ;;  %v168_v53 = vadd.f32 %v154_v48, %v144_v38  ;;  %v172_v54 = vadd.f32 %v154_v48, %v148_v39 }
  0xa0   :  { %177 = vst.msk [vmem:[#allocation5 + $0x8] sm:$0xff] %vm38_vm0, %v169_v50  ;;  %181 = vst.msk [vmem:[#allocation5 + $0x28] sm:$0xff] %vm38_vm0, %v173_v51 }
  0xa1   :  { %176 = vst.msk [vmem:[#allocation5] sm:$0xff] %vm38_vm0, %v168_v53  ;;  %180 = vst.msk [vmem:[#allocation5 + $0x20] sm:$0xff] %vm38_vm0, %v172_v54  ;;  %v162_v46 = vpop.permute.xlu1 %161  ;;  %v166_v49 = vpop.permute.xlu0 %165 }
  0xa2   :  { %v170_v52 = vadd.f32 %v162_v46, %v146_v42  ;;  %v174_v55 = vadd.f32 %v162_v46, %v150_v44  ;;  %v171_v56 = vadd.f32 %v166_v49, %v147_v43  ;;  %v175_v57 = vadd.f32 %v166_v49, %v151_v45 }
  0xa4   :  { %178 = vst.msk [vmem:[#allocation5 + $0x10] sm:$0xff] %vm38_vm0, %v170_v52  ;;  %182 = vst.msk [vmem:[#allocation5 + $0x30] sm:$0xff] %vm38_vm0, %v174_v55 }
  0xa5   :  { %179 = vst.msk [vmem:[#allocation5 + $0x18] sm:$0xff] %vm38_vm0, %v171_v56  ;;  %183 = vst.msk [vmem:[#allocation5 + $0x38] sm:$0xff] %vm38_vm0, %v175_v57 }
  0xa6   :  { %248 = shalt.err (!%p245_p12)
}
  0xa7   :  { %s249_s6 = scalar_lea.hbm %s352_s2, 1024 }
  0xa8   :  { %p250_p13 = scmp.ne.s32.totalorder %s352_s2, %s249_s6  ;;  %p253_p0 = scmp.lt.u32.totalorder %s249_s6, %s352_s2 }
  0xaa   :  { %p255_p1 = pnand %p253_p0, %p250_p13 }
  0xac   :  { %258 = shalt.err (!%p255_p1)
}
  0xad   :  { %195 = dma.vmem_to_hbm [thread:$0]  %s190_s30, 1024, %s352_s2, [#allocation4], %s264_s19, %s264_s19, %s265_s20  }
  0xae   :  { %261 = dma.done.wait [#allocation4], 1024  }
  0xaf   :  { %262 = vsyncadd [#allocation4], 4294966272 }
  0xb0   :  { %199 = vsyncpa [#allocation3], 1 }
  0xb1   :  { %200 = vsyncpa [#allocation4], 1 }

</bundles_post_ra>
